<compile_context>
chip_gen: v5e
topology: v5e:2x2
jax: 0.10.0
libtpu: 0.0.40
codegen_flags: <defaults>
</compile_context>

<pallas_src>
import jax
import jax.numpy as jnp
from jax.experimental import pallas as pl
from jax.experimental.pallas import tpu as pltpu

D_IN = 446
H1 = 512
H2 = 128
D_OUT = 30
D_OUT_PAD = 128     # lane-dense output block; wrapper slices back to 30


def mlp_kernel(x_ref, w1_ref, b1_ref, w2_ref, b2_ref, w3_ref, b3_ref, o_ref):
    # In-kernel f32 -> bf16 cast (cheap VPU work, hidden under the matmuls).
    # K = 446 is padded internally by Mosaic; no explicit feature padding.
    x = x_ref[...].astype(jnp.bfloat16)

    # Layer 1: (bt, 446) @ (446, 512)  -- bf16 MXU, f32 accumulate
    h = jnp.dot(x, w1_ref[...], preferred_element_type=jnp.float32)
    h = jnp.maximum(h + b1_ref[...], 0.0)

    # Layer 2: (bt, 512) @ (512, 128)
    h = jnp.dot(h.astype(jnp.bfloat16), w2_ref[...],
                preferred_element_type=jnp.float32)
    h = jnp.maximum(h + b2_ref[...], 0.0)

    # Layer 3 (output, zero-padded 30 -> 128 lanes): (bt, 128) @ (128, 128)
    h = jnp.dot(h.astype(jnp.bfloat16), w3_ref[...],
                preferred_element_type=jnp.float32)
    o_ref[...] = (h + b3_ref[...]).astype(o_ref.dtype)


def prepare_kernel_params(params):
    """Cast weights to bf16; pad only the tiny final layer's output lanes.

    w1: (446, 512) bf16 (no K padding needed; Mosaic pads internally)
    w2: (512, 128) bf16
    w3: (128, 30) -> (128, 128) bf16 (zero cols for padded output lanes)
    biases stay f32; b3 padded (1, 30) -> (1, 128).
    """
    w1 = params["w1t"].astype(jnp.bfloat16)
    b1 = params["b1"].astype(jnp.float32)

    w2 = params["w2t"].astype(jnp.bfloat16)
    b2 = params["b2"].astype(jnp.float32)

    w3 = jnp.zeros((H2, D_OUT_PAD), jnp.float32).at[:, :D_OUT].set(params["w3t"])
    w3 = w3.astype(jnp.bfloat16)
    b3 = jnp.zeros((1, D_OUT_PAD), jnp.float32).at[:, :D_OUT].set(params["b3"])

    return w1, b1, w2, b2, w3, b3


def _choose_batch_tile(batch, desired):
    """Tile = multiple of 8, capped at `desired`, and small enough that the
    grid has >= 2 steps when batch > 8 (so v7x's two TensorCores both work)."""
    if batch <= 8:
        return batch                       # single full block (block == array)
    half = (batch + 1) // 2                # cdiv(batch, 2)
    half_up = ((half + 7) // 8) * 8        # round up to sublane multiple
    return max(8, min(desired, half_up))


def model_location30_forward(x, params, *, batch_tile=1024):
    """x: (B, 446) float32. params: dict of pre-transposed (in, out) weights."""
    B, d_in = x.shape
    assert d_in == D_IN

    bt = _choose_batch_tile(B, batch_tile)
    grid = pl.cdiv(B, bt)                  # partial last block allowed

    w1, b1, w2, b2, w3, b3 = prepare_kernel_params(params)

    flops = 2 * B * (D_IN * H1 + H1 * H2 + H2 * D_OUT_PAD)
    bytes_accessed = (
        x.size * 4                                       # f32 input
        + (w1.size + w2.size + w3.size) * 2              # bf16 weights
        + (b1.size + b2.size + b3.size) * 4              # f32 biases
        + B * D_OUT_PAD * 2                              # bf16 output
    )

    def full(arr):
        return pl.BlockSpec(arr.shape, lambda i: (0, 0))

    out = pl.pallas_call(
        mlp_kernel,
        out_shape=jax.ShapeDtypeStruct((B, D_OUT_PAD), jnp.bfloat16),
        grid_spec=pltpu.PrefetchScalarGridSpec(
            num_scalar_prefetch=0,
            grid=(grid,),
            in_specs=[
                pl.BlockSpec((bt, D_IN), lambda i: (i, 0)),   # raw f32 x tile
                full(w1), full(b1),
                full(w2), full(b2),
                full(w3), full(b3),
            ],
            out_specs=pl.BlockSpec((bt, D_OUT_PAD), lambda i: (i, 0)),
        ),
        compiler_params=pltpu.CompilerParams(
            dimension_semantics=("parallel",),
            vmem_limit_bytes=48 * 1024 * 1024,
        ),
        cost_estimate=pl.CostEstimate(
            flops=flops, transcendentals=0, bytes_accessed=bytes_accessed),
    )(x, w1, b1, w2, b2, w3, b3)

    # Slice off the padded lanes and upcast; padded batch rows never exist in
    # `out` because out-of-bounds rows of the last block are masked on store.
    return out[:, :D_OUT].astype(jnp.float32)


def init_params(key):
    """Deterministic init mimicking PyTorch's default Linear init
    (uniform in +/- 1/sqrt(fan_in)). Weights stored pre-transposed (in, out)."""
    dims = [(D_IN, H1), (H1, H2), (H2, D_OUT)]
    params = {}
    for idx, (fan_in, fan_out) in enumerate(dims, start=1):
        key, kw, kb = jax.random.split(key, 3)
        bound = 1.0 / jnp.sqrt(fan_in)
        params[f"w{idx}t"] = jax.random.uniform(
            kw, (fan_in, fan_out), jnp.float32, minval=-bound, maxval=bound)
        params[f"b{idx}"] = jax.random.uniform(
            kb, (1, fan_out), jnp.float32, minval=-bound, maxval=bound)
    return params


def reference_forward(x, params):
    """Plain-JAX reference using the same bf16-matmul / f32-accumulate recipe,
    with the final result rounded through bf16 to match kernel output storage."""
    h = jnp.dot(x.astype(jnp.bfloat16), params["w1t"].astype(jnp.bfloat16),
                preferred_element_type=jnp.float32)
    h = jnp.maximum(h + params["b1"], 0.0)
    h = jnp.dot(h.astype(jnp.bfloat16), params["w2t"].astype(jnp.bfloat16),
                preferred_element_type=jnp.float32)
    h = jnp.maximum(h + params["b2"], 0.0)
    h = jnp.dot(h.astype(jnp.bfloat16), params["w3t"].astype(jnp.bfloat16),
                preferred_element_type=jnp.float32)
    h = h + params["b3"]
    return h.astype(jnp.bfloat16).astype(jnp.float32)


if __name__ == "__main__":
    key = jax.random.PRNGKey(0)
    key, kx1, kx2 = jax.random.split(key, 3)
    params = init_params(key)

    # Small test batch (single full block path).
    B1 = 4
    x1 = jax.random.normal(kx1, (B1, D_IN), jnp.float32)
    out1 = jax.block_until_ready(model_location30_forward(x1, params))
    ref1 = reference_forward(x1, params)
    assert out1.shape == (B1, D_OUT)
    assert jnp.allclose(out1, ref1, atol=2e-2, rtol=2e-2), (
        float(jnp.max(jnp.abs(out1 - ref1))))

    # Batch that exercises the multi-step grid + partial last block path.
    B2 = 20
    x2 = jax.random.normal(kx2, (B2, D_IN), jnp.float32)
    out2 = jax.block_until_ready(model_location30_forward(x2, params))
    ref2 = reference_forward(x2, params)
    assert out2.shape == (B2, D_OUT)
    assert jnp.allclose(out2, ref2, atol=2e-2, rtol=2e-2), (
        float(jnp.max(jnp.abs(out2 - ref2))))

    print("KERNEL_OK")
</pallas_src>

<mosaic_0001>
module attributes {stable_mosaic.version = 11 : i64} {
  func.func @mlp_kernel(%arg0: i32, %arg1: memref<4x446xf32, #tpu.memory_space<vmem>>, %arg2: memref<446x512xbf16, #tpu.memory_space<vmem>>, %arg3: memref<1x512xf32, #tpu.memory_space<vmem>>, %arg4: memref<512x128xbf16, #tpu.memory_space<vmem>>, %arg5: memref<1x128xf32, #tpu.memory_space<vmem>>, %arg6: memref<128x128xbf16, #tpu.memory_space<vmem>>, %arg7: memref<1x128xf32, #tpu.memory_space<vmem>>, %arg8: memref<4x128xbf16, #tpu.memory_space<vmem>>) attributes {dimension_semantics = [#tpu.dimension_semantics<parallel>], iteration_bounds = array<i64: 1>, scalar_prefetch = 0 : i64, scratch_operands = 0 : i64, tpu.core_type = #tpu.core_type<tc>, window_params = [{transform_indices = @transform_0, window_bounds = array<i64: 4, 446>}, {pipeline_mode = #tpu.pipeline_mode<synchronous>, transform_indices = @transform_1, window_bounds = array<i64: 446, 512>}, {pipeline_mode = #tpu.pipeline_mode<synchronous>, transform_indices = @transform_2, window_bounds = array<i64: 1, 512>}, {pipeline_mode = #tpu.pipeline_mode<synchronous>, transform_indices = @transform_3, window_bounds = array<i64: 512, 128>}, {pipeline_mode = #tpu.pipeline_mode<synchronous>, transform_indices = @transform_4, window_bounds = array<i64: 1, 128>}, {pipeline_mode = #tpu.pipeline_mode<synchronous>, transform_indices = @transform_5, window_bounds = array<i64: 128, 128>}, {pipeline_mode = #tpu.pipeline_mode<synchronous>, transform_indices = @transform_6, window_bounds = array<i64: 1, 128>}, {transform_indices = @transform_7, window_bounds = array<i64: 4, 128>}]} {
    %c0 = arith.constant 0 : index
    %c0_0 = arith.constant 0 : index
    %0 = vector.load %arg1[%c0, %c0_0] : memref<4x446xf32, #tpu.memory_space<vmem>>, vector<4x446xf32>
    %1 = arith.truncf %0 : vector<4x446xf32> to vector<4x446xbf16>
    %c0_1 = arith.constant 0 : index
    %c0_2 = arith.constant 0 : index
    %2 = vector.load %arg2[%c0_1, %c0_2] : memref<446x512xbf16, #tpu.memory_space<vmem>>, vector<446x512xbf16>
    %cst = arith.constant dense<0.000000e+00> : vector<4x512xf32>
    %3 = tpu.matmul %1, %2, %cst {dimension_numbers = #tpu.dot_dimension_numbers<[1], [0], [0], [1], [0, 0, 1, 1], [], []>} : vector<4x446xbf16>, vector<446x512xbf16>, vector<4x512xf32> -> vector<4x512xf32>
    %c0_3 = arith.constant 0 : index
    %c0_4 = arith.constant 0 : index
    %4 = vector.load %arg3[%c0_3, %c0_4] : memref<1x512xf32, #tpu.memory_space<vmem>>, vector<1x512xf32>
    %5 = vector.broadcast %4 : vector<1x512xf32> to vector<4x512xf32>
    %6 = arith.addf %3, %5 : vector<4x512xf32>
    %cst_5 = arith.constant 0.000000e+00 : f32
    %7 = vector.broadcast %cst_5 : f32 to vector<4x512xf32>
    %8 = arith.maximumf %6, %7 : vector<4x512xf32>
    %9 = arith.truncf %8 : vector<4x512xf32> to vector<4x512xbf16>
    %c0_6 = arith.constant 0 : index
    %c0_7 = arith.constant 0 : index
    %10 = vector.load %arg4[%c0_6, %c0_7] : memref<512x128xbf16, #tpu.memory_space<vmem>>, vector<512x128xbf16>
    %cst_8 = arith.constant dense<0.000000e+00> : vector<4x128xf32>
    %11 = tpu.matmul %9, %10, %cst_8 {dimension_numbers = #tpu.dot_dimension_numbers<[1], [0], [0], [1], [0, 0, 1, 1], [], []>} : vector<4x512xbf16>, vector<512x128xbf16>, vector<4x128xf32> -> vector<4x128xf32>
    %c0_9 = arith.constant 0 : index
    %c0_10 = arith.constant 0 : index
    %12 = vector.load %arg5[%c0_9, %c0_10] : memref<1x128xf32, #tpu.memory_space<vmem>>, vector<1x128xf32>
    %13 = vector.broadcast %12 : vector<1x128xf32> to vector<4x128xf32>
    %14 = arith.addf %11, %13 : vector<4x128xf32>
    %cst_11 = arith.constant 0.000000e+00 : f32
    %15 = vector.broadcast %cst_11 : f32 to vector<4x128xf32>
    %16 = arith.maximumf %14, %15 : vector<4x128xf32>
    %17 = arith.truncf %16 : vector<4x128xf32> to vector<4x128xbf16>
    %c0_12 = arith.constant 0 : index
    %c0_13 = arith.constant 0 : index
    %18 = vector.load %arg6[%c0_12, %c0_13] : memref<128x128xbf16, #tpu.memory_space<vmem>>, vector<128x128xbf16>
    %cst_14 = arith.constant dense<0.000000e+00> : vector<4x128xf32>
    %19 = tpu.matmul %17, %18, %cst_14 {dimension_numbers = #tpu.dot_dimension_numbers<[1], [0], [0], [1], [0, 0, 1, 1], [], []>} : vector<4x128xbf16>, vector<128x128xbf16>, vector<4x128xf32> -> vector<4x128xf32>
    %c0_15 = arith.constant 0 : index
    %c0_16 = arith.constant 0 : index
    %20 = vector.load %arg7[%c0_15, %c0_16] : memref<1x128xf32, #tpu.memory_space<vmem>>, vector<1x128xf32>
    %21 = vector.broadcast %20 : vector<1x128xf32> to vector<4x128xf32>
    %22 = arith.addf %19, %21 : vector<4x128xf32>
    %23 = arith.truncf %22 : vector<4x128xf32> to vector<4x128xbf16>
    %c0_17 = arith.constant 0 : index
    %c0_18 = arith.constant 0 : index
    %24 = vector.load %arg8[%c0_17, %c0_18] : memref<4x128xbf16, #tpu.memory_space<vmem>>, vector<4x128xbf16>
    tpu.vector_store %arg8[%c0_17, %c0_18], %23 {strides = array<i32>} : memref<4x128xbf16, #tpu.memory_space<vmem>>, vector<4x128xbf16>,
    return
  }
  func.func @transform_0(%arg0: i32) -> (i32, i32) {
    %c0_i32 = arith.constant 0 : i32
    %c0_i32_0 = arith.constant 0 : i32
    return %arg0, %c0_i32 : i32, i32
  }
  func.func @transform_1(%arg0: i32) -> (i32, i32) {
    %c0_i32 = arith.constant 0 : i32
    %c0_i32_0 = arith.constant 0 : i32
    %c0_i32_1 = arith.constant 0 : i32
    return %c0_i32, %c0_i32_0 : i32, i32
  }
  func.func @transform_2(%arg0: i32) -> (i32, i32) {
    %c0_i32 = arith.constant 0 : i32
    %c0_i32_0 = arith.constant 0 : i32
    %c0_i32_1 = arith.constant 0 : i32
    return %c0_i32, %c0_i32_0 : i32, i32
  }
  func.func @transform_3(%arg0: i32) -> (i32, i32) {
    %c0_i32 = arith.constant 0 : i32
    %c0_i32_0 = arith.constant 0 : i32
    %c0_i32_1 = arith.constant 0 : i32
    return %c0_i32, %c0_i32_0 : i32, i32
  }
  func.func @transform_4(%arg0: i32) -> (i32, i32) {
    %c0_i32 = arith.constant 0 : i32
    %c0_i32_0 = arith.constant 0 : i32
    %c0_i32_1 = arith.constant 0 : i32
    return %c0_i32, %c0_i32_0 : i32, i32
  }
  func.func @transform_5(%arg0: i32) -> (i32, i32) {
    %c0_i32 = arith.constant 0 : i32
    %c0_i32_0 = arith.constant 0 : i32
    %c0_i32_1 = arith.constant 0 : i32
    return %c0_i32, %c0_i32_0 : i32, i32
  }
  func.func @transform_6(%arg0: i32) -> (i32, i32) {
    %c0_i32 = arith.constant 0 : i32
    %c0_i32_0 = arith.constant 0 : i32
    %c0_i32_1 = arith.constant 0 : i32
    return %c0_i32, %c0_i32_0 : i32, i32
  }
  func.func @transform_7(%arg0: i32) -> (i32, i32) {
    %c0_i32 = arith.constant 0 : i32
    %c0_i32_0 = arith.constant 0 : i32
    return %arg0, %c0_i32 : i32, i32
  }
}

</mosaic_0001>

<bundles_post_ra>
// kernel: tpu_custom_call.1
= control target key start
LH: loop header
LB: loop body
LE: loop exit
PB: predicated region body
PF: predicated region fallthrough
CT: control target
= control target key end

     0   :  { %12 = vsyncpa [#allocation3], 0  ;;  %s2488_s0 = inlined_call_operand.hbm [shape: f32[4,446], index: 0, kind: input, shape index: {}]   ;;  %s2489_s1 = inlined_call_operand.hbm [shape: bf16[446,512], index: 1, kind: input, shape index: {}]   ;;  %s2490_s2 = inlined_call_operand.hbm [shape: f32[1,512], index: 2, kind: input, shape index: {}]   ;;  %s2491_s3 = inlined_call_operand.hbm [shape: bf16[512,128], index: 3, kind: input, shape index: {}]   ;;  %s2492_s4 = inlined_call_operand.vmem [shape: f32[1,128], index: 4, kind: input, shape index: {}]   ;;  %s2493_s5 = inlined_call_operand.hbm [shape: bf16[128,128], index: 5, kind: input, shape index: {}]   ;;  %s2494_s6 = inlined_call_operand.vmem [shape: f32[1,128], index: 6, kind: input, shape index: {}]   ;;  %s2495_s7 = inlined_call_operand.hbm [shape: bf16[4,128], index: 7, kind: output, shape index: {}]  }
   0x1   :  { %13 = vsyncpa [#allocation6], 0 }
   0x2   :  { %14 = vsyncpa [#allocation9], 0  ;;  %s31_s26 = sshll.u32 %s2489_s1, 4  ;;  %s32_s26 = int_to_ptr.hbm [resolvable:$true] %s31_s26 }
   0x3   :  { %15 = vsyncpa [#allocation4], 0  ;;  %s2376_s27 = smov [#allocation5]   ;;  %s55_s8 = sshll.u32 %s2491_s3, 4  ;;  %s56_s8 = int_to_ptr.hbm [resolvable:$true] %s55_s8 }
   0x4   :  { %s33_s28 = sshll.u32 %s2376_s27, 4  ;;  %s2377_s9 = smov 256   ;;  %s34_s28 = int_to_ptr.vmem [resolvable:$true] %s33_s28 }
   0x5   :  { %s2378_s10 = smov 16   ;;  %s2379_s11 = smov [#allocation8]  }
   0x6   :  { %39 = dma.hbm_to_vmem [thread:$0]  %s32_s26, 14336, %s34_s28, [#allocation6], %s2377_s9, %s2377_s9, %s2378_s10  }
   0x7   :  { %s57_s12 = sshll.u32 %s2379_s11, 4  ;;  %s2380_s13 = smov 64   ;;  %s58_s12 = int_to_ptr.vmem [resolvable:$true] %s57_s12 }
   0x8   :  { %s2381_s14 = smov 4   ;;  %s21_s16 = sshll.u32 %s2488_s0, 4  ;;  %s22_s16 = int_to_ptr.hbm [resolvable:$true] %s21_s16 }
   0x9   :  { %63 = dma.hbm_to_vmem [thread:$0]  %s56_s8, 4096, %s58_s12, [#allocation9], %s2380_s13, %s2380_s13, %s2381_s14  }
   0xa   :  { %s2382_s17 = smov [#allocation2]   ;;  %s45_s20 = sshll.u32 %s2490_s2, 4  ;;  %s46_s20 = int_to_ptr.hbm [resolvable:$true] %s45_s20 }
   0xb   :  { %s23_s18 = sshll.u32 %s2382_s17, 4  ;;  %s2383_s21 = smov [#allocation7]   ;;  %s24_s18 = int_to_ptr.vmem [resolvable:$true] %s23_s18 }
   0xc   :  { %26 = dma.hbm_to_vmem [thread:$0]  %s22_s16, 256, %s24_s18, [#allocation3]  }
   0xd   :  { %s47_s22 = sshll.u32 %s2383_s21, 4  ;;  %s70_s25 = sshll.u32 %s2493_s5, 4  ;;  %s48_s22 = int_to_ptr.vmem [resolvable:$true] %s47_s22  ;;  %s71_s25 = int_to_ptr.hbm [resolvable:$true] %s70_s25 }
   0xe   :  { %50 = dma.hbm_to_vmem [thread:$0]  %s46_s20, 64, %s48_s22, [#allocation6]  }
   0xf   :  { %s2384_s0 = smov [#allocation10]  }
  0x10   :  { %s72_s26 = sshll.u32 %s2384_s0, 4  ;;  %s73_s26 = int_to_ptr.vmem [resolvable:$true] %s72_s26 }
  0x11   :  { %78 = dma.hbm_to_vmem [thread:$0]  %s71_s25, 1024, %s73_s26, [#allocation9], %s2380_s13, %s2380_s13, %s2381_s14  }
  0x12   :  { %2368 = dma.done.wait [#allocation3], 256  }
  0x13   :  { %2369 = vsyncadd [#allocation3], 4294967040 }
  0x14   :  { %2370 = dma.done.wait [#allocation6], 14400  }
  0x15   :  { %2371 = vsyncadd [#allocation6], 4294952896 }
  0x16   :  { %2372 = dma.done.wait [#allocation9], 5120  }
  0x17   :  { %2373 = vsyncadd [#allocation9], 4294962176  ;;  %vm803_vm0 = vcmask 1046528   ;;  %v1562_v0 = vld [vmem:[#allocation5 + $0xe0] sm:$0xf]  ;;  %vm799_vm1 = vcmask 506880  }
  0x18   :  { %v2090_v1 = vld [vmem:[#allocation5 + $0xec] sm:$0xf0]  ;;  %v1690_v2 = vld [vmem:[#allocation5 + $0x1e0] sm:$0xf]  ;;  %v2088_v46 = vld [vmem:[#allocation5 + $0xe4] sm:$0xf] }
  0x19   :  { %v1563_v3 = vor.u32 %v2090_v1, %v1562_v0  ;;  %v2122_v4 = vld [vmem:[#allocation5 + $0x1ec] sm:$0xf0]  ;;  %v1818_v5 = vld [vmem:[#allocation5 + $0x2e0] sm:$0xf]  ;;  %v1564_v47 = vld [vmem:[#allocation5 + $0xf0] sm:$0xf0] }
  0x1a   :  { %v2154_v6 = vld [vmem:[#allocation5 + $0x2ec] sm:$0xf0]  ;;  %v1691_v7 = vor.u32 %v2122_v4, %v1690_v2  ;;  %v1882_v9 = vld [vmem:[#allocation5 + $0x360] sm:$0xf]  ;;  %v1567_v57 = vor.u32 %v2088_v46, %v1564_v47  ;;  %v2084_v59 = vld [vmem:[#allocation5 + $0xc4] sm:$0xf] }
  0x1b   :  { %v1819_v8 = vor.u32 %v2154_v6, %v1818_v5  ;;  %v2170_v10 = vld [vmem:[#allocation5 + $0x36c] sm:$0x70]  ;;  %v1546_v11 = vld [vmem:[#allocation5 + $0xc0] sm:$0xf]  ;;  %816 = vmatpush.bf16.msra.mxu0 %v1563_v3  ;;  %v1548_v60 = vld [vmem:[#allocation5 + $0xd0] sm:$0xf0] }
  0x1c   :  { %v1883_v12 = vor.u32 %v2170_v10, %v1882_v9  ;;  %v2086_v13 = vld [vmem:[#allocation5 + $0xcc] sm:$0xf0]  ;;  %v1674_v14 = vld [vmem:[#allocation5 + $0x1c0] sm:$0xf]  ;;  %829 = vmatpush.bf16.msra.mxu1 %v1691_v7  ;;  %v1551_v5 = vor.u32 %v2084_v59, %v1548_v60  ;;  %v2080_v7 = vld [vmem:[#allocation5 + $0xa4] sm:$0xf] }
  0x1d   :  { %v2118_v15 = vld [vmem:[#allocation5 + $0x1cc] sm:$0xf0]  ;;  %842 = vmatpush.bf16.msra.mxu2 %v1819_v8  ;;  %v1547_v16 = vor.u32 %v2086_v13, %v1546_v11  ;;  %v1802_v18 = vld [vmem:[#allocation5 + $0x2c0] sm:$0xf]  ;;  %v1532_v8 = vld [vmem:[#allocation5 + $0xb0] sm:$0xf0] }
  0x1e   :  { %v1675_v17 = vor.u32 %v2118_v15, %v1674_v14  ;;  %v2150_v19 = vld [vmem:[#allocation5 + $0x2cc] sm:$0xf0]  ;;  %v1866_v20 = vld [vmem:[#allocation5 + $0x340] sm:$0xf]  ;;  %v805_v21 = vsel %vm803_vm0, %v1883_v12, 0  ;;  %s2385_s29 = smov [#allocation11]  }
  0x1f   :  { %v1803_v22 = vor.u32 %v2150_v19, %v1802_v18  ;;  %v2166_v23 = vld [vmem:[#allocation5 + $0x34c] sm:$0xf0]  ;;  %v1530_v24 = vld [vmem:[#allocation5 + $0xa0] sm:$0xf]  ;;  %859 = vmatpush.bf16.msra.mxu3 %v805_v21  ;;  %817 = vmatpush.bf16.msra.mxu0 %v1547_v16  ;;  %v1516_v18 = vld [vmem:[#allocation5 + $0x90] sm:$0xf0] }
  0x20   :  { %v1867_v25 = vor.u32 %v2166_v23, %v1866_v20  ;;  %v2082_v26 = vld [vmem:[#allocation5 + $0xac] sm:$0xf0]  ;;  %v1658_v27 = vld [vmem:[#allocation5 + $0x1a0] sm:$0xf]  ;;  %830 = vmatpush.bf16.msra.mxu1 %v1675_v17  ;;  %v2076_v17 = vld [vmem:[#allocation5 + $0x84] sm:$0xf]  ;;  %v1535_v20 = vor.u32 %v2080_v7, %v1532_v8 }
  0x21   :  { %v2114_v28 = vld [vmem:[#allocation5 + $0x1ac] sm:$0xf0]  ;;  %v1531_v29 = vor.u32 %v2082_v26, %v1530_v24  ;;  %v1786_v30 = vld [vmem:[#allocation5 + $0x2a0] sm:$0xf]  ;;  %843 = vmatpush.bf16.msra.mxu2 %v1803_v22  ;;  %v103_v19 = vld [vmem:[#allocation2 + $0x8] sm:$0xff]  ;;  %s1434_s30 = sshll.u32 %s2385_s29, 4  ;;  %s1435_s30 = int_to_ptr.vmem [resolvable:$true] %s1434_s30 }
  0x22   :  { %v2146_v31 = vld [vmem:[#allocation5 + $0x2ac] sm:$0xf0]  ;;  %v1850_v32 = vld [vmem:[#allocation5 + $0x320] sm:$0xf]  ;;  %v1659_v33 = vor.u32 %v2114_v28, %v1658_v27  ;;  %v2168_v23 = vld [vmem:[#allocation5 + $0x364] sm:$0xf] }
  0x23   :  { %v1787_v34 = vor.u32 %v2146_v31, %v1786_v30  ;;  %v2162_v35 = vld [vmem:[#allocation5 + $0x32c] sm:$0xf0]  ;;  %v1514_v36 = vld [vmem:[#allocation5 + $0x80] sm:$0xf]  ;;  %860 = vmatpush.bf16.msra.mxu3 %v1867_v25  ;;  %818 = vmatpush.bf16.msra.mxu0 %v1531_v29  ;;  %v1884_v24 = vld [vmem:[#allocation5 + $0x370] sm:$0x70] }
  0x24   :  { %v2078_v37 = vld [vmem:[#allocation5 + $0x8c] sm:$0xf0]  ;;  %v1642_v38 = vld [vmem:[#allocation5 + $0x180] sm:$0xf]  ;;  %v1851_v41 = vor.u32 %v2162_v35, %v1850_v32  ;;  %831 = vmatpush.bf16.msra.mxu1 %v1659_v33  ;;  %v2120_v32 = vld [vmem:[#allocation5 + $0x1e4] sm:$0xf] }
  0x25   :  { %v2110_v39 = vld [vmem:[#allocation5 + $0x18c] sm:$0xf0]  ;;  %v1770_v40 = vld [vmem:[#allocation5 + $0x280] sm:$0xf]  ;;  %v1515_v44 = vor.u32 %v2078_v37, %v1514_v36  ;;  %844 = vmatpush.bf16.msra.mxu2 %v1787_v34  ;;  %v1692_v33 = vld [vmem:[#allocation5 + $0x1f0] sm:$0xf0]  ;;  %v1887_v36 = vor.u32 %v2168_v23, %v1884_v24  ;;  %v1519_v37 = vor.u32 %v2076_v17, %v1516_v18 }
  0x26   :  { %v2142_v42 = vld [vmem:[#allocation5 + $0x28c] sm:$0xf0]  ;;  %v1834_v43 = vld [vmem:[#allocation5 + $0x300] sm:$0xf]  ;;  %v1643_v48 = vor.u32 %v2110_v39, %v1642_v38  ;;  %v2152_v34 = vld [vmem:[#allocation5 + $0x2e4] sm:$0xf] }
  0x27   :  { %v2158_v45 = vld [vmem:[#allocation5 + $0x30c] sm:$0xf0]  ;;  %v1771_v49 = vor.u32 %v2142_v42, %v1770_v40  ;;  %v1498_v50 = vld [vmem:[#allocation5 + $0x60] sm:$0xf]  ;;  %861 = vmatpush.bf16.msra.mxu3 %v1851_v41  ;;  %819 = vmatpush.bf16.msra.mxu0 %v1515_v44  ;;  %v1820_v35 = vld [vmem:[#allocation5 + $0x2f0] sm:$0xf0] }
  0x28   :  { %v2074_v51 = vld [vmem:[#allocation5 + $0x6c] sm:$0xf0]  ;;  %v1626_v52 = vld [vmem:[#allocation5 + $0x160] sm:$0xf]  ;;  %v1835_v56 = vor.u32 %v2158_v45, %v1834_v43  ;;  %832 = vmatpush.bf16.msra.mxu1 %v1643_v48  ;;  %108 = vst [vmem:[#allocation1 + $0x10] ss:$2 sm:$0xff] %v103_v19  ;;  %v1695_v43 = vor.u32 %v2120_v32, %v1692_v33  ;;  %v1823_v44 = vor.u32 %v2152_v34, %v1820_v35 }
  0x29   :  { %v2106_v53 = vld [vmem:[#allocation5 + $0x16c] sm:$0xf0]  ;;  %v1754_v54 = vld [vmem:[#allocation5 + $0x260] sm:$0xf]  ;;  %v1499_v58 = vor.u32 %v2074_v51, %v1498_v50  ;;  %845 = vmatpush.bf16.msra.mxu2 %v1771_v49  ;;  %v2072_v41 = vld [vmem:[#allocation5 + $0x64] sm:$0xf] }
  0x2a   :  { %v2138_v55 = vld [vmem:[#allocation5 + $0x26c] sm:$0xf0]  ;;  %v1627_v61 = vor.u32 %v2106_v53, %v1626_v52  ;;  %v1482_v63 = vld [vmem:[#allocation5 + $0x40] sm:$0xf]  ;;  %v1500_v42 = vld [vmem:[#allocation5 + $0x70] sm:$0xf0] }
  0x2b   :  { %v1755_v62 = vor.u32 %v2138_v55, %v1754_v54  ;;  %v2070_v0 = vld [vmem:[#allocation5 + $0x4c] sm:$0xf0]  ;;  %v1610_v1 = vld [vmem:[#allocation5 + $0x140] sm:$0xf]  ;;  %862 = vmatpush.bf16.msra.mxu3 %v1835_v56  ;;  %820 = vmatpush.bf16.msra.mxu0 %v1499_v58  ;;  %v2116_v45 = vld [vmem:[#allocation5 + $0x1c4] sm:$0xf]  ;;  %v1503_v51 = vor.u32 %v2072_v41, %v1500_v42 }
  0x2c   :  { %v2102_v2 = vld [vmem:[#allocation5 + $0x14c] sm:$0xf0]  ;;  %v1738_v3 = vld [vmem:[#allocation5 + $0x240] sm:$0xf]  ;;  %v1483_v6 = vor.u32 %v2070_v0, %v1482_v63  ;;  %833 = vmatpush.bf16.msra.mxu1 %v1627_v61  ;;  %v1676_v46 = vld [vmem:[#allocation5 + $0x1d0] sm:$0xf0] }
  0x2d   :  { %v2134_v4 = vld [vmem:[#allocation5 + $0x24c] sm:$0xf0]  ;;  %846 = vmatpush.bf16.msra.mxu2 %v1755_v62  ;;  %v1611_v9 = vor.u32 %v2102_v2, %v1610_v1  ;;  %v1466_v11 = vld [vmem:[#allocation5 + $0x20] sm:$0xf]  ;;  %v2148_v47 = vld [vmem:[#allocation5 + $0x2c4] sm:$0xf]  ;;  %v1679_v58 = vor.u32 %v2116_v45, %v1676_v46 }
  0x2e   :  { %v1739_v10 = vor.u32 %v2134_v4, %v1738_v3  ;;  %v2066_v12 = vld [vmem:[#allocation5 + $0x2c] sm:$0xf0]  ;;  %v1594_v13 = vld [vmem:[#allocation5 + $0x120] sm:$0xf]  ;;  %v808_v48 = vsel %vm803_vm0, %v1887_v36, 0 }
  0x2f   :  { %868 = vmatpush.bf16.msrb.mxu3 %v1567_v57  ;;  %v2098_v14 = vld [vmem:[#allocation5 + $0x12c] sm:$0xf0]  ;;  %v1722_v15 = vld [vmem:[#allocation5 + $0x220] sm:$0xf]  ;;  %821 = vmatpush.bf16.msra.mxu0 %v1483_v6  ;;  %v1467_v21 = vor.u32 %v2066_v12, %v1466_v11  ;;  %v1804_v49 = vld [vmem:[#allocation5 + $0x2d0] sm:$0xf0] }
  0x30   :  { %v2130_v16 = vld [vmem:[#allocation5 + $0x22c] sm:$0xf0]  ;;  %v1450_v22 = vld [vmem:[#allocation5] sm:$0xf]  ;;  %834 = vmatpush.bf16.msra.mxu1 %v1611_v9  ;;  %v1595_v25 = vor.u32 %v2098_v14, %v1594_v13  ;;  %v2164_v50 = vld [vmem:[#allocation5 + $0x344] sm:$0xf]  ;;  %v1807_v59 = vor.u32 %v2148_v47, %v1804_v49 }
  0x31   :  { %847 = vmatpush.bf16.msra.mxu2 %v1739_v10  ;;  %v1723_v26 = vor.u32 %v2130_v16, %v1722_v15  ;;  %v2062_v27 = vld [vmem:[#allocation5 + $0xc] sm:$0xf0]  ;;  %v1578_v28 = vld [vmem:[#allocation5 + $0x100] sm:$0xf]  ;;  %v1868_v52 = vld [vmem:[#allocation5 + $0x350] sm:$0xf0] }
  0x32   :  { %v2094_v29 = vld [vmem:[#allocation5 + $0x10c] sm:$0xf0]  ;;  %v1706_v30 = vld [vmem:[#allocation5 + $0x200] sm:$0xf]  ;;  %v1451_v38 = vor.u32 %v2062_v27, %v1450_v22  ;;  %v2068_v53 = vld [vmem:[#allocation5 + $0x44] sm:$0xf]  ;;  %v1871_v62 = vor.u32 %v2164_v50, %v1868_v52 }
  0x33   :  { %869 = vmatpush.bf16.msrb.mxu3 %v1551_v5  ;;  %v2126_v31 = vld [vmem:[#allocation5 + $0x20c] sm:$0xf0]  ;;  %822 = vmatpush.bf16.msra.mxu0 %v1467_v21  ;;  %v1579_v39 = vor.u32 %v2094_v29, %v1578_v28  ;;  %v1484_v54 = vld [vmem:[#allocation5 + $0x50] sm:$0xf0]  ;;  %v2112_v55 = vld [vmem:[#allocation5 + $0x1a4] sm:$0xf] }
  0x34   :  { %835 = vmatpush.bf16.msra.mxu1 %v1595_v25  ;;  %v1707_v40 = vor.u32 %v2126_v31, %v1706_v30  ;;  %v1660_v56 = vld [vmem:[#allocation5 + $0x1b0] sm:$0xf0]  ;;  %v2144_v60 = vld [vmem:[#allocation5 + $0x2a4] sm:$0xf]  ;;  %v1487_v1 = vor.u32 %v2068_v53, %v1484_v54  ;;  %v2091_v21 = vld [vmem:[#allocation5 + $0xf4] sm:$0xf0] }
  0x35   :  { %848 = vmatpush.bf16.msra.mxu2 %v1723_v26  ;;  %v102_v57 = vld [vmem:[#allocation2] sm:$0xff]  ;;  %v112_v63 = vld.sshfl [vmem:[#allocation1 + $0x18] sm:$0xff pattern:$0x75316420]  ;;  %v1663_v9 = vor.u32 %v2112_v55, %v1660_v56  ;;  %v1698_v27 = vld [vmem:[#allocation5 + $0x1e8] sm:$0xf] }
  0x36   :  { %v1788_v61 = vld [vmem:[#allocation5 + $0x2b0] sm:$0xf0]  ;;  %106 = vst [vmem:[#allocation1] ss:$2 sm:$0xff] %v102_v57  ;;  %v2443_v2 = vpack.c.bf16 %v112_v63, %v112_v63  ;;  %v2160_v3 = vld [vmem:[#allocation5 + $0x324] sm:$0xf] }
  0x37   :  { %870 = vmatpush.bf16.msrb.mxu3 %v1535_v20  ;;  %823 = vmatpush.bf16.msra.mxu0 %v1451_v38  ;;  %v111_v0 = vld.sshfl [vmem:[#allocation1 + $0x10] sm:$0xff pattern:$0x75316420]  ;;  %v1852_v4 = vld [vmem:[#allocation5 + $0x330] sm:$0xf0]  ;;  %v1791_v10 = vor.u32 %v2144_v60, %v1788_v61 }
  0x38   :  { %836 = vmatpush.bf16.msra.mxu1 %v1579_v39  ;;  %v2445_v5 = vpack.c.bf16 %v111_v0, %v111_v0  ;;  %v2064_v6 = vld [vmem:[#allocation5 + $0x24] sm:$0xf]  ;;  %v1468_v7 = vld [vmem:[#allocation5 + $0x30] sm:$0xf0]  ;;  %1896 = vmatmul.msk.bf16.vlgmr.msra.gmra.mxu3 %vm799_vm1, %v2443_v2  ;;  %v1855_v14 = vor.u32 %v2160_v3, %v1852_v4  ;;  %v1570_v20 = vld [vmem:[#allocation5 + $0xe8] sm:$0xf] }
  0x39   :  { %849 = vmatpush.bf16.msra.mxu2 %v1707_v40  ;;  %v2108_v8 = vld [vmem:[#allocation5 + $0x184] sm:$0xf]  ;;  %v1644_v11 = vld [vmem:[#allocation5 + $0x190] sm:$0xf0]  ;;  %v1471_v18 = vor.u32 %v2064_v6, %v1468_v7  ;;  %v2123_v28 = vld [vmem:[#allocation5 + $0x1f4] sm:$0xf0]  ;;  %v1571_v36 = vor.u32 %v2091_v21, %v1570_v20 }
  0x3a   :  { %v2140_v12 = vld [vmem:[#allocation5 + $0x284] sm:$0xf]  ;;  %v1772_v13 = vld [vmem:[#allocation5 + $0x290] sm:$0xf0]  ;;  %v1647_v22 = vor.u32 %v2108_v8, %v1644_v11  ;;  %v1554_v38 = vld [vmem:[#allocation5 + $0xc8] sm:$0xf] }
  0x3b   :  { %871 = vmatpush.bf16.msrb.mxu3 %v1519_v37  ;;  %881 = vmatpush.bf16.msrb.mxu0 %v1695_v43  ;;  %v2156_v15 = vld [vmem:[#allocation5 + $0x304] sm:$0xf]  ;;  %v1836_v16 = vld [vmem:[#allocation5 + $0x310] sm:$0xf0]  ;;  %v1775_v25 = vor.u32 %v2140_v12, %v1772_v13  ;;  %v1699_v37 = vor.u32 %v2123_v28, %v1698_v27  ;;  %v2087_v39 = vld [vmem:[#allocation5 + $0xd4] sm:$0xf0] }
  0x3c   :  { %894 = vmatpush.bf16.msrb.mxu1 %v1823_v44  ;;  %v2060_v17 = vld [vmem:[#allocation5 + $0x4] sm:$0xf]  ;;  %850 = vmatmul.bf16.vlgmr.msra.gmra.mxu2 %v2445_v5  ;;  %v1452_v19 = vld [vmem:[#allocation5 + $0x10] sm:$0xf0]  ;;  %v1839_v31 = vor.u32 %v2156_v15, %v1836_v16  ;;  %v1682_v42 = vld [vmem:[#allocation5 + $0x1c8] sm:$0xf] }
  0x3d   :  { %911 = vmatpush.bf16.msrb.mxu2 %v808_v48  ;;  %v109_v23 = vld.sshfl [vmem:[#allocation1] sm:$0xff pattern:$0x75316420]  ;;  %v110_v24 = vld.sshfl [vmem:[#allocation1 + $0x8] sm:$0xff pattern:$0x75316420]  ;;  %v1455_v35 = vor.u32 %v2060_v17, %v1452_v19  ;;  %v1555_v48 = vor.u32 %v2087_v39, %v1554_v38 }
  0x3e   :  { %v2450_v26 = vpack.c.bf16 %v109_v23, %v109_v23  ;;  %v2452_v29 = vpack.c.bf16 %v110_v24, %v110_v24  ;;  %v2104_v30 = vld [vmem:[#allocation5 + $0x164] sm:$0xf]  ;;  %v1628_v32 = vld [vmem:[#allocation5 + $0x170] sm:$0xf0]  ;;  %v2119_v43 = vld [vmem:[#allocation5 + $0x1d4] sm:$0xf0] }
  0x3f   :  { %872 = vmatpush.bf16.msrb.mxu3 %v1503_v51  ;;  %882 = vmatpush.bf16.msrb.mxu0 %v1679_v58  ;;  %v2136_v33 = vld [vmem:[#allocation5 + $0x264] sm:$0xf]  ;;  %v1756_v34 = vld [vmem:[#allocation5 + $0x270] sm:$0xf0]  ;;  %v1631_v40 = vor.u32 %v2104_v30, %v1628_v32  ;;  %v1683_v49 = vor.u32 %v2119_v43, %v1682_v42  ;;  %v1538_v50 = vld [vmem:[#allocation5 + $0xa8] sm:$0xf] }
  0x40   :  { %895 = vmatpush.bf16.msrb.mxu1 %v1807_v59  ;;  %824 = vmatmul.bf16.vlgmr.msra.gmra.mxu0 %v2450_v26  ;;  %v1759_v41 = vor.u32 %v2136_v33, %v1756_v34  ;;  %v2100_v44 = vld [vmem:[#allocation5 + $0x144] sm:$0xf]  ;;  %v1612_v45 = vld [vmem:[#allocation5 + $0x150] sm:$0xf0]  ;;  %v2083_v51 = vld [vmem:[#allocation5 + $0xb4] sm:$0xf0] }
  0x41   :  { %912 = vmatpush.bf16.msrb.mxu2 %v1871_v62  ;;  %837 = vmatmul.bf16.vlgmr.msra.gmra.mxu1 %v2452_v29  ;;  %v2132_v46 = vld [vmem:[#allocation5 + $0x244] sm:$0xf]  ;;  %v1740_v47 = vld [vmem:[#allocation5 + $0x250] sm:$0xf0]  ;;  %v1615_v52 = vor.u32 %v2100_v44, %v1612_v45  ;;  %v1666_v54 = vld [vmem:[#allocation5 + $0x1a8] sm:$0xf]  ;;  %v1539_v60 = vor.u32 %v2083_v51, %v1538_v50 }
  0x42   :  { %v1743_v53 = vor.u32 %v2132_v46, %v1740_v47  ;;  %v2115_v55 = vld [vmem:[#allocation5 + $0x1b4] sm:$0xf0]  ;;  %v2096_v56 = vld [vmem:[#allocation5 + $0x124] sm:$0xf]  ;;  %v1596_v57 = vld [vmem:[#allocation5 + $0x130] sm:$0xf0] }
  0x43   :  { %873 = vmatpush.bf16.msrb.mxu3 %v1487_v1  ;;  %883 = vmatpush.bf16.msrb.mxu0 %v1663_v9  ;;  %v2128_v58 = vld [vmem:[#allocation5 + $0x224] sm:$0xf]  ;;  %v1724_v59 = vld [vmem:[#allocation5 + $0x230] sm:$0xf0]  ;;  %v1522_v61 = vld [vmem:[#allocation5 + $0x88] sm:$0xf]  ;;  %v1667_v62 = vor.u32 %v2115_v55, %v1666_v54  ;;  %v1599_v3 = vor.u32 %v2096_v56, %v1596_v57 }
  0x44   :  { %896 = vmatpush.bf16.msrb.mxu1 %v1791_v10  ;;  %v2079_v63 = vld [vmem:[#allocation5 + $0x94] sm:$0xf0]  ;;  %v1890_v0 = vld [vmem:[#allocation5 + $0x368] sm:$0xf]  ;;  %v1727_v4 = vor.u32 %v2128_v58, %v1724_v59  ;;  %v2092_v8 = vld [vmem:[#allocation5 + $0x104] sm:$0xf] }
  0x45   :  { %913 = vmatpush.bf16.msrb.mxu2 %v1855_v14  ;;  %v2171_v1 = vld [vmem:[#allocation5 + $0x374] sm:$0x70]  ;;  %v1650_v6 = vld [vmem:[#allocation5 + $0x188] sm:$0xf]  ;;  %v1580_v9 = vld [vmem:[#allocation5 + $0x110] sm:$0xf0]  ;;  %v1523_v12 = vor.u32 %v2079_v63, %v1522_v61 }
  0x46   :  { %v2111_v7 = vld [vmem:[#allocation5 + $0x194] sm:$0xf0]  ;;  %v2124_v10 = vld [vmem:[#allocation5 + $0x204] sm:$0xf]  ;;  %v1708_v11 = vld [vmem:[#allocation5 + $0x210] sm:$0xf0]  ;;  %v1891_v15 = vor.u32 %v2171_v1, %v1890_v0  ;;  %v1583_v19 = vor.u32 %v2092_v8, %v1580_v9 }
  0x47   :  { %874 = vmatpush.bf16.msrb.mxu3 %v1471_v18  ;;  %884 = vmatpush.bf16.msrb.mxu0 %v1647_v22  ;;  %v1826_v13 = vld [vmem:[#allocation5 + $0x2e8] sm:$0xf]  ;;  %v2155_v14 = vld [vmem:[#allocation5 + $0x2f4] sm:$0xf0]  ;;  %v1651_v16 = vor.u32 %v2111_v7, %v1650_v6  ;;  %v1711_v20 = vor.u32 %v2124_v10, %v1708_v11  ;;  %v1572_v61 = vld [vmem:[#allocation5 + $0xf8] sm:$0xf0] }
  0x48   :  { %897 = vmatpush.bf16.msrb.mxu1 %v1775_v25  ;;  %v1506_v17 = vld [vmem:[#allocation5 + $0x68] sm:$0xf]  ;;  %v2075_v18 = vld [vmem:[#allocation5 + $0x74] sm:$0xf0]  ;;  %v1827_v23 = vor.u32 %v2155_v14, %v1826_v13  ;;  %v811_v28 = vsel %vm803_vm0, %v1891_v15, 0 }
  0x49   :  { %914 = vmatpush.bf16.msrb.mxu2 %v1839_v31  ;;  %v1634_v21 = vld [vmem:[#allocation5 + $0x168] sm:$0xf]  ;;  %v2107_v22 = vld [vmem:[#allocation5 + $0x174] sm:$0xf0]  ;;  %v1507_v27 = vor.u32 %v2075_v18, %v1506_v17  ;;  %v2121_v63 = vld [vmem:[#allocation5 + $0x1ec] sm:$0xf] }
  0x4a   :  { %v1810_v24 = vld [vmem:[#allocation5 + $0x2c8] sm:$0xf]  ;;  %v2151_v25 = vld [vmem:[#allocation5 + $0x2d4] sm:$0xf0]  ;;  %v1635_v32 = vor.u32 %v2107_v22, %v1634_v21  ;;  %v1700_v0 = vld [vmem:[#allocation5 + $0x1f8] sm:$0xf0] }
  0x4b   :  { %875 = vmatpush.bf16.msrb.mxu3 %v1455_v35  ;;  %885 = vmatpush.bf16.msrb.mxu0 %v1631_v40  ;;  %v1874_v30 = vld [vmem:[#allocation5 + $0x348] sm:$0xf]  ;;  %v2167_v31 = vld [vmem:[#allocation5 + $0x354] sm:$0xf0]  ;;  %v1828_v6 = vld [vmem:[#allocation5 + $0x2f8] sm:$0xf0] }
  0x4c   :  { %898 = vmatpush.bf16.msrb.mxu1 %v1759_v41  ;;  %1897 = vmatmul.msk.bf16.vlgmr.msrb.gmra.mxu2 %vm799_vm1, %v2443_v2  ;;  %v1490_v33 = vld [vmem:[#allocation5 + $0x48] sm:$0xf]  ;;  %v2071_v34 = vld [vmem:[#allocation5 + $0x54] sm:$0xf0]  ;;  %v1875_v38 = vor.u32 %v2167_v31, %v1874_v30  ;;  %v2085_v13 = vld [vmem:[#allocation5 + $0xcc] sm:$0xf] }
  0x4d   :  { %920 = vmatpush.bf16.msra.mxu2 %v1571_v36  ;;  %v1618_v35 = vld [vmem:[#allocation5 + $0x148] sm:$0xf]  ;;  %v2103_v36 = vld [vmem:[#allocation5 + $0x154] sm:$0xf0]  ;;  %v1491_v40 = vor.u32 %v2071_v34, %v1490_v33  ;;  %v1556_v14 = vld [vmem:[#allocation5 + $0xd8] sm:$0xf0] }
  0x4e   :  { %876 = vmatmul.bf16.vlgmr.msrb.gmra.mxu3 %v2450_v26  ;;  %v1794_v39 = vld [vmem:[#allocation5 + $0x2a8] sm:$0xf]  ;;  %v2147_v41 = vld [vmem:[#allocation5 + $0x2b4] sm:$0xf0]  ;;  %v1619_v44 = vor.u32 %v2103_v36, %v1618_v35  ;;  %v1684_v17 = vld [vmem:[#allocation5 + $0x1d8] sm:$0xf0]  ;;  %v1559_v21 = vor.u32 %v2085_v13, %v1556_v14 }
  0x4f   :  { %933 = vmatpush.bf16.msra.mxu3 %v1699_v37  ;;  %886 = vmatpush.bf16.msrb.mxu0 %v1615_v52  ;;  %v1811_v37 = vor.u32 %v2151_v25, %v1810_v24  ;;  %v1858_v42 = vld [vmem:[#allocation5 + $0x328] sm:$0xf]  ;;  %v2163_v43 = vld [vmem:[#allocation5 + $0x334] sm:$0xf0]  ;;  %v2081_v25 = vld [vmem:[#allocation5 + $0xac] sm:$0xf] }
  0x50   :  { %899 = vmatpush.bf16.msrb.mxu1 %v1743_v53  ;;  %v1474_v45 = vld [vmem:[#allocation5 + $0x28] sm:$0xf]  ;;  %v2067_v46 = vld [vmem:[#allocation5 + $0x34] sm:$0xf0]  ;;  %v1859_v50 = vor.u32 %v2163_v43, %v1858_v42  ;;  %v2113_v30 = vld [vmem:[#allocation5 + $0x1ac] sm:$0xf] }
  0x51   :  { %921 = vmatpush.bf16.msra.mxu2 %v1555_v48  ;;  %v1602_v47 = vld [vmem:[#allocation5 + $0x128] sm:$0xf]  ;;  %v2099_v48 = vld [vmem:[#allocation5 + $0x134] sm:$0xf0]  ;;  %v1475_v54 = vor.u32 %v2067_v46, %v1474_v45  ;;  %v1668_v31 = vld [vmem:[#allocation5 + $0x1b8] sm:$0xf0] }
  0x52   :  { %v1458_v51 = vld [vmem:[#allocation5 + $0x8] sm:$0xf]  ;;  %v2063_v52 = vld [vmem:[#allocation5 + $0x14] sm:$0xf0]  ;;  %v1603_v58 = vor.u32 %v2099_v48, %v1602_v47  ;;  %v1796_v34 = vld [vmem:[#allocation5 + $0x2b8] sm:$0xf0] }
  0x53   :  { %934 = vmatpush.bf16.msra.mxu3 %v1683_v49  ;;  %887 = vmatpush.bf16.msrb.mxu0 %v1599_v3  ;;  %v1795_v49 = vor.u32 %v2147_v41, %v1794_v39  ;;  %v1778_v53 = vld [vmem:[#allocation5 + $0x288] sm:$0xf]  ;;  %v2143_v55 = vld [vmem:[#allocation5 + $0x294] sm:$0xf0]  ;;  %v1459_v7 = vor.u32 %v2063_v52, %v1458_v51  ;;  %v2077_v39 = vld [vmem:[#allocation5 + $0x8c] sm:$0xf] }
  0x54   :  { %900 = vmatpush.bf16.msrb.mxu1 %v1727_v4  ;;  %v1842_v56 = vld [vmem:[#allocation5 + $0x308] sm:$0xf]  ;;  %v2159_v57 = vld [vmem:[#allocation5 + $0x314] sm:$0xf0]  ;;  %v1779_v1 = vor.u32 %v2143_v55, %v1778_v53  ;;  %v2153_v4 = vld [vmem:[#allocation5 + $0x2ec] sm:$0xf] }
  0x55   :  { %922 = vmatpush.bf16.msra.mxu2 %v1539_v60  ;;  %v1586_v59 = vld [vmem:[#allocation5 + $0x108] sm:$0xf]  ;;  %v2089_v60 = vld [vmem:[#allocation5 + $0xec] sm:$0xf]  ;;  %v1843_v3 = vor.u32 %v2159_v57, %v1842_v56  ;;  %v2139_v10 = vld [vmem:[#allocation5 + $0x274] sm:$0xf0]  ;;  %v1831_v15 = vor.u32 %v2153_v4, %v1828_v6 }
  0x56   :  { %v1575_v8 = vor.u32 %v2089_v60, %v1572_v61  ;;  %v1762_v9 = vld [vmem:[#allocation5 + $0x268] sm:$0xf]  ;;  %v2109_v42 = vld [vmem:[#allocation5 + $0x18c] sm:$0xf]  ;;  %v1652_v43 = vld [vmem:[#allocation5 + $0x198] sm:$0xf0] }
  0x57   :  { %935 = vmatpush.bf16.msra.mxu3 %v1667_v62  ;;  %888 = vmatpush.bf16.msrb.mxu0 %v1583_v19  ;;  %v2095_v62 = vld [vmem:[#allocation5 + $0x114] sm:$0xf0]  ;;  %v1763_v18 = vor.u32 %v2139_v10, %v1762_v9  ;;  %v2149_v19 = vld [vmem:[#allocation5 + $0x2cc] sm:$0xf]  ;;  %v1746_v22 = vld [vmem:[#allocation5 + $0x248] sm:$0xf] }
  0x58   :  { %901 = vmatpush.bf16.msrb.mxu1 %v1711_v20  ;;  %v1587_v11 = vor.u32 %v2095_v62, %v1586_v59  ;;  %v1812_v20 = vld [vmem:[#allocation5 + $0x2d8] sm:$0xf0]  ;;  %v1730_v36 = vld [vmem:[#allocation5 + $0x228] sm:$0xf]  ;;  %v2141_v45 = vld [vmem:[#allocation5 + $0x28c] sm:$0xf] }
  0x59   :  { %923 = vmatpush.bf16.msra.mxu2 %v1523_v12  ;;  %v1703_v12 = vor.u32 %v2121_v63, %v1700_v0  ;;  %v1780_v46 = vld [vmem:[#allocation5 + $0x298] sm:$0xf0]  ;;  %v1714_v48 = vld [vmem:[#allocation5 + $0x208] sm:$0xf]  ;;  %v2073_v51 = vld [vmem:[#allocation5 + $0x6c] sm:$0xf] }
  0x5a   :  { %889 = vmatmul.bf16.vlgmr.msrb.gmra.mxu0 %v2452_v29  ;;  %v1508_v52 = vld [vmem:[#allocation5 + $0x78] sm:$0xf0]  ;;  %v1783_v53 = vor.u32 %v2141_v45, %v1780_v46  ;;  %v2137_v57 = vld [vmem:[#allocation5 + $0x26c] sm:$0xf] }
  0x5b   :  { %936 = vmatpush.bf16.msra.mxu3 %v1651_v16  ;;  %946 = vmatpush.bf16.msra.mxu0 %v1827_v23  ;;  %v2117_v16 = vld [vmem:[#allocation5 + $0x1cc] sm:$0xf]  ;;  %v2135_v23 = vld [vmem:[#allocation5 + $0x254] sm:$0xf0]  ;;  %v1636_v55 = vld [vmem:[#allocation5 + $0x178] sm:$0xf0]  ;;  %v1511_v59 = vor.u32 %v2073_v51, %v1508_v52 }
  0x5c   :  { %963 = vmatpush.bf16.msra.mxu1 %v811_v28  ;;  %v1687_v24 = vor.u32 %v2117_v16, %v1684_v17  ;;  %v1815_v28 = vor.u32 %v2149_v19, %v1812_v20  ;;  %v1747_v33 = vor.u32 %v2135_v23, %v1746_v22  ;;  %v2069_v61 = vld [vmem:[#allocation5 + $0x4c] sm:$0xf]  ;;  %v1492_v62 = vld [vmem:[#allocation5 + $0x58] sm:$0xf0]  ;;  %v2182_v52 = vld [vmem:[#allocation8 + $0x50] sm:$0xff] }
  0x5d   :  { %924 = vmatpush.bf16.msra.mxu2 %v1507_v27  ;;  %902 = vmatmul.bf16.vlgmr.msrb.gmra.mxu1 %v2445_v5  ;;  %v1540_v27 = vld [vmem:[#allocation5 + $0xb8] sm:$0xf0]  ;;  %v2101_v0 = vld [vmem:[#allocation5 + $0x14c] sm:$0xf] }
  0x5e   :  { %v1543_v35 = vor.u32 %v2081_v25, %v1540_v27  ;;  %v1748_v4 = vld [vmem:[#allocation5 + $0x258] sm:$0xf0]  ;;  %v2065_v9 = vld [vmem:[#allocation5 + $0x2c] sm:$0xf] }
  0x5f   :  { %937 = vmatpush.bf16.msra.mxu3 %v1635_v32  ;;  %947 = vmatpush.bf16.msra.mxu0 %v1811_v37  ;;  %v2145_v32 = vld [vmem:[#allocation5 + $0x2ac] sm:$0xf]  ;;  %v2131_v37 = vld [vmem:[#allocation5 + $0x234] sm:$0xf0]  ;;  %v2179_v6 = vld [vmem:[#allocation8 + $0x38] sm:$0xff] }
  0x60   :  { %964 = vmatpush.bf16.msra.mxu1 %v1875_v38  ;;  %v1671_v38 = vor.u32 %v2113_v30, %v1668_v31  ;;  %v1799_v41 = vor.u32 %v2145_v32, %v1796_v34  ;;  %v1476_v10 = vld [vmem:[#allocation5 + $0x38] sm:$0xf0]  ;;  %v2097_v13 = vld [vmem:[#allocation5 + $0x12c] sm:$0xf] }
  0x61   :  { %925 = vmatpush.bf16.msra.mxu2 %v1491_v40  ;;  %v1524_v40 = vld [vmem:[#allocation5 + $0x98] sm:$0xf0]  ;;  %v2169_v17 = vld [vmem:[#allocation5 + $0x36c] sm:$0xf]  ;;  %v1479_v19 = vor.u32 %v2065_v9, %v1476_v10 }
  0x62   :  { %v1527_v47 = vor.u32 %v2077_v39, %v1524_v40  ;;  %v1604_v14 = vld [vmem:[#allocation5 + $0x138] sm:$0xf0]  ;;  %v2177_v23 = vld [vmem:[#allocation8 + $0x28] sm:$0xff] }
  0x63   :  { %938 = vmatpush.bf16.msra.mxu3 %v1619_v44  ;;  %948 = vmatpush.bf16.msra.mxu0 %v1795_v49  ;;  %v1731_v44 = vor.u32 %v2131_v37, %v1730_v36  ;;  %v2127_v49 = vld [vmem:[#allocation5 + $0x214] sm:$0xf0]  ;;  %v1732_v16 = vld [vmem:[#allocation5 + $0x238] sm:$0xf0]  ;;  %v1607_v20 = vor.u32 %v2097_v13, %v1604_v14  ;;  %v2093_v25 = vld [vmem:[#allocation5 + $0x10c] sm:$0xf] }
  0x64   :  { %965 = vmatpush.bf16.msra.mxu1 %v1859_v50  ;;  %v1655_v50 = vor.u32 %v2109_v42, %v1652_v43  ;;  %v1715_v56 = vor.u32 %v2127_v49, %v1714_v48  ;;  %v1460_v22 = vld [vmem:[#allocation5 + $0x18] sm:$0xf0]  ;;  %v2125_v30 = vld [vmem:[#allocation5 + $0x20c] sm:$0xf]  ;;  %v2174_v48 = vld [vmem:[#allocation8 + $0x10] sm:$0xff] }
  0x65   :  { %926 = vmatpush.bf16.msra.mxu2 %v1475_v54  ;;  %v2105_v54 = vld [vmem:[#allocation5 + $0x16c] sm:$0xf]  ;;  %v1588_v27 = vld [vmem:[#allocation5 + $0x118] sm:$0xf0]  ;;  %v2186_v49 = vld [vmem:[#allocation8 + $0x70] sm:$0xff] }
  0x66   :  { %v1639_v60 = vor.u32 %v2105_v54, %v1636_v55  ;;  %v1716_v31 = vld [vmem:[#allocation5 + $0x218] sm:$0xf0]  ;;  %v2165_v36 = vld [vmem:[#allocation5 + $0x34c] sm:$0xf]  ;;  %v2473_v54 = vld [vmem:[#allocation7] sm:$0xf] }
  0x67   :  { %939 = vmatpush.bf16.msra.mxu3 %v1603_v58  ;;  %949 = vmatpush.bf16.msra.mxu0 %v1779_v1  ;;  %v1764_v58 = vld [vmem:[#allocation5 + $0x278] sm:$0xf0]  ;;  %v1719_v34 = vor.u32 %v2125_v30, %v1716_v31  ;;  %v2161_v40 = vld [vmem:[#allocation5 + $0x32c] sm:$0xf]  ;;  %v2180_v55 = vld [vmem:[#allocation8 + $0x40] sm:$0xff]  ;;  %v236_v13 = vperm.slane %v2473_v54, 1 }
  0x68   :  { %966 = vmatpush.bf16.msra.mxu1 %v1843_v3  ;;  %v1767_v63 = vor.u32 %v2137_v57, %v1764_v58  ;;  %v1620_v1 = vld [vmem:[#allocation5 + $0x158] sm:$0xf0]  ;;  %v2133_v3 = vld [vmem:[#allocation5 + $0x24c] sm:$0xf]  ;;  %v2194_v57 = vld [vmem:[#allocation8 + $0xb0] sm:$0xff] }
  0x69   :  { %927 = vmatpush.bf16.msra.mxu2 %v1459_v7  ;;  %v1495_v7 = vor.u32 %v2069_v61, %v1492_v62  ;;  %v1876_v37 = vld [vmem:[#allocation5 + $0x358] sm:$0xf0]  ;;  %v2193_v62 = vld [vmem:[#allocation8 + $0xa8] sm:$0xff]  ;;  %v2190_v14 = vld [vmem:[#allocation8 + $0x90] sm:$0xff] }
  0x6a   :  { %v1879_v39 = vor.u32 %v2165_v36, %v1876_v37  ;;  %v2175_v42 = vld [vmem:[#allocation8 + $0x18] sm:$0xff]  ;;  %v2200_v36 = vld [vmem:[#allocation8 + $0xe0] sm:$0xff] }
  0x6b   :  { %940 = vmatpush.bf16.msra.mxu3 %v1587_v11  ;;  %950 = vmatpush.bf16.msra.mxu0 %v1763_v18  ;;  %v2178_v11 = vld [vmem:[#allocation8 + $0x30] sm:$0xff]  ;;  %v1892_v18 = vld [vmem:[#allocation5 + $0x378] sm:$0x70] }
  0x6c   :  { %972 = vmatpush.bf16.msrb.mxu1 %v1575_v8  ;;  %928 = vmatmul.bf16.vlgmr.msra.gmra.mxu2 %v2450_v26  ;;  %v1623_v8 = vor.u32 %v2101_v0, %v1620_v1  ;;  %v1844_v45 = vld [vmem:[#allocation5 + $0x318] sm:$0xf0] }
  0x6d   :  { %985 = vmatpush.bf16.msrb.mxu2 %v1703_v12  ;;  %1898 = vmatmul.msk.bf16.vlgmr.msra.gmra.mxu1 %vm799_vm1, %v2443_v2  ;;  %v1751_v12 = vor.u32 %v2133_v3, %v1748_v4  ;;  %v2183_v51 = vld [vmem:[#allocation8 + $0x58] sm:$0xff]  ;;  %v2192_v3 = vld [vmem:[#allocation8 + $0xa0] sm:$0xff] }
  0x6e   :  { %941 = vmatmul.bf16.vlgmr.msra.gmra.mxu3 %v2452_v29  ;;  %v2191_v10 = vld [vmem:[#allocation8 + $0x98] sm:$0xff] }
  0x6f   :  { %998 = vmatpush.bf16.msrb.mxu3 %v1831_v15  ;;  %951 = vmatpush.bf16.msra.mxu0 %v1747_v33  ;;  %v2129_v15 = vld [vmem:[#allocation5 + $0x22c] sm:$0xf]  ;;  %v1591_v33 = vor.u32 %v2093_v25, %v1588_v27 }
  0x70   :  { %973 = vmatpush.bf16.msrb.mxu1 %v1559_v21  ;;  %v2061_v21 = vld [vmem:[#allocation5 + $0xc] sm:$0xf] }
  0x71   :  { %986 = vmatpush.bf16.msrb.mxu2 %v1687_v24  ;;  %v1735_v24 = vor.u32 %v2129_v15, %v1732_v16  ;;  %v1463_v32 = vor.u32 %v2061_v21, %v1460_v22  ;;  %v2203_v22 = vld [vmem:[#allocation8 + $0xf8] sm:$0xff] }
  0x73   :  { %999 = vmatpush.bf16.msrb.mxu3 %v1815_v28  ;;  %952 = vmatpush.bf16.msra.mxu0 %v1731_v44  ;;  %v1895_v28 = vor.u32 %v2169_v17, %v1892_v18  ;;  %v2157_v44 = vld [vmem:[#allocation5 + $0x30c] sm:$0xf] }
  0x74   :  { %974 = vmatpush.bf16.msrb.mxu1 %v1543_v35  ;;  %v1847_v46 = vor.u32 %v2157_v44, %v1844_v45  ;;  %v2189_v18 = vld [vmem:[#allocation8 + $0x88] sm:$0xff] }
  0x75   :  { %987 = vmatpush.bf16.msrb.mxu2 %v1671_v38  ;;  %v814_v35 = vsel %vm803_vm0, %v1895_v28, 0  ;;  %v2176_v38 = vld [vmem:[#allocation8 + $0x20] sm:$0xff]  ;;  %v2202_v28 = vld [vmem:[#allocation8 + $0xf0] sm:$0xff]  ;;  %v2197_v45 = vld [vmem:[#allocation8 + $0xc8] sm:$0xff] }
  0x77   :  { %1000 = vmatpush.bf16.msrb.mxu3 %v1799_v41  ;;  %953 = vmatpush.bf16.msra.mxu0 %v1715_v56  ;;  %v1860_v41 = vld [vmem:[#allocation5 + $0x338] sm:$0xf0]  ;;  %v235_v56 = vperm.slane %v2473_v54, 0 }
  0x78   :  { %975 = vmatpush.bf16.msrb.mxu1 %v1527_v47  ;;  %v1863_v43 = vor.u32 %v2161_v40, %v1860_v41  ;;  %v2187_v47 = vld [vmem:[#allocation8 + $0x78] sm:$0xff]  ;;  %v2198_v41 = vld [vmem:[#allocation8 + $0xd0] sm:$0xff] }
  0x79   :  { %988 = vmatpush.bf16.msrb.mxu2 %v1655_v50  ;;  %v2184_v50 = vld [vmem:[#allocation8 + $0x60] sm:$0xff] }
  0x7a   :  { %954 = vmatmul.bf16.vlgmr.msra.gmra.mxu0 %v2445_v5 }
  0x7b   :  { %1001 = vmatpush.bf16.msrb.mxu3 %v1783_v53  ;;  %1292 = vmatpush.bf16.msrb.mxu0 %v2179_v6  ;;  %v2181_v53 = vld [vmem:[#allocation8 + $0x48] sm:$0xff] }
  0x7c   :  { %976 = vmatpush.bf16.msrb.mxu1 %v1511_v59 }
  0x7d   :  { %989 = vmatpush.bf16.msrb.mxu2 %v1639_v60 }
  0x7f   :  { %1002 = vmatpush.bf16.msrb.mxu3 %v1767_v63  ;;  %1293 = vmatpush.bf16.msrb.mxu0 %v2178_v11 }
  0x80   :  { %977 = vmatpush.bf16.msrb.mxu1 %v1495_v7 }
  0x81   :  { %990 = vmatpush.bf16.msrb.mxu2 %v1623_v8 }
  0x83   :  { %1003 = vmatpush.bf16.msrb.mxu3 %v1751_v12  ;;  %1294 = vmatpush.bf16.msrb.mxu0 %v2177_v23  ;;  %v2188_v23 = vld [vmem:[#allocation8 + $0x80] sm:$0xff] }
  0x84   :  { %978 = vmatpush.bf16.msrb.mxu1 %v1479_v19 }
  0x85   :  { %991 = vmatpush.bf16.msrb.mxu2 %v1607_v20 }
  0x87   :  { %1004 = vmatpush.bf16.msrb.mxu3 %v1735_v24  ;;  %1295 = vmatpush.bf16.msrb.mxu0 %v2176_v38  ;;  %v2199_v38 = vld [vmem:[#allocation8 + $0xd8] sm:$0xff] }
  0x88   :  { %979 = vmatpush.bf16.msrb.mxu1 %v1463_v32 }
  0x89   :  { %992 = vmatpush.bf16.msrb.mxu2 %v1591_v33 }
  0x8b   :  { %1005 = vmatpush.bf16.msrb.mxu3 %v1719_v34  ;;  %980 = vmatmul.bf16.vlgmr.msrb.gmra.mxu1 %v2450_v26  ;;  %v2173_v26 = vld [vmem:[#allocation8 + $0x8] sm:$0xff] }
  0x8c   :  { %1015 = vmatpush.bf16.msra.mxu1 %v814_v35  ;;  %993 = vmatmul.bf16.vlgmr.msrb.gmra.mxu2 %v2452_v29  ;;  %v2185_v29 = vld [vmem:[#allocation8 + $0x68] sm:$0xff] }
  0x8d   :  { %1296 = vmatpush.bf16.msrb.mxu0 %v2175_v42  ;;  %v2201_v35 = vld [vmem:[#allocation8 + $0xe8] sm:$0xff] }
  0x8e   :  { %1006 = vmatmul.bf16.vlgmr.msrb.gmra.mxu3 %v2445_v5  ;;  %v2172_v5 = vld [vmem:[#allocation8] sm:$0xff] }
  0x8f   :  { %1331 = vmatpush.bf16.msra.mxu3 %v2203_v22 }
  0x90   :  { %1016 = vmatpush.bf16.msra.mxu1 %v1879_v39  ;;  %v237_v39 = vperm.slane %v2473_v54, 2 }
  0x91   :  { %1297 = vmatpush.bf16.msrb.mxu0 %v2174_v48 }
  0x93   :  { %1332 = vmatpush.bf16.msra.mxu3 %v2202_v28 }
  0x94   :  { %1017 = vmatpush.bf16.msra.mxu1 %v1863_v43 }
  0x95   :  { %1298 = vmatpush.bf16.msrb.mxu0 %v2173_v26  ;;  %v2196_v26 = vld [vmem:[#allocation8 + $0xc0] sm:$0xff] }
  0x97   :  { %1333 = vmatpush.bf16.msra.mxu3 %v2201_v35 }
  0x98   :  { %1018 = vmatpush.bf16.msra.mxu1 %v1847_v46 }
  0x99   :  { %1299 = vmatpush.bf16.msrb.mxu0 %v2172_v5 }
  0x9b   :  { %1899 = vmatmul.msk.bf16.vlgmr.msra.gmra.mxu1 %vm799_vm1, %v2443_v2  ;;  %v2195_v2 = vld [vmem:[#allocation8 + $0xb8] sm:$0xff]  ;;  %1334 = vmatpush.bf16.msra.mxu3 %v2200_v36 }
  0x9c   :  { %1305 = vmatpush.bf16.msrb.mxu1 %v2187_v47  ;;  %1318 = vmatpush.bf16.msra.mxu2 %v2195_v2  ;;  %v238_v2 = vperm.slane %v2473_v54, 3  ;;  %v2210_v54 = vld [vmem:[#allocation10 + $0x30] sm:$0xff] }
  0x9f   :  { %1335 = vmatpush.bf16.msra.mxu3 %v2199_v38 }
  0xa0   :  { %1306 = vmatpush.bf16.msrb.mxu1 %v2186_v49  ;;  %1319 = vmatpush.bf16.msra.mxu2 %v2194_v57 }
  0xa3   :  { %1336 = vmatpush.bf16.msra.mxu3 %v2198_v41 }
  0xa4   :  { %1307 = vmatpush.bf16.msrb.mxu1 %v2185_v29  ;;  %1320 = vmatpush.bf16.msra.mxu2 %v2193_v62 }
  0xa7   :  { %1337 = vmatpush.bf16.msra.mxu3 %v2197_v45 }
  0xa8   :  { %1308 = vmatpush.bf16.msrb.mxu1 %v2184_v50  ;;  %1321 = vmatpush.bf16.msra.mxu2 %v2192_v3 }
  0xab   :  { %1338 = vmatpush.bf16.msra.mxu3 %v2196_v26 }
  0xac   :  { %1309 = vmatpush.bf16.msrb.mxu1 %v2183_v51  ;;  %1322 = vmatpush.bf16.msra.mxu2 %v2191_v10 }
  0xb0   :  { %1310 = vmatpush.bf16.msrb.mxu1 %v2182_v52  ;;  %1323 = vmatpush.bf16.msra.mxu2 %v2190_v14  ;;  %v2206_v14 = vld [vmem:[#allocation10 + $0x10] sm:$0xff] }
  0xb4   :  { %1311 = vmatpush.bf16.msrb.mxu1 %v2181_v53  ;;  %1324 = vmatpush.bf16.msra.mxu2 %v2189_v18 }
  0xb8   :  { %1312 = vmatpush.bf16.msrb.mxu1 %v2180_v55  ;;  %1325 = vmatpush.bf16.msra.mxu2 %v2188_v23 }
  0xbb   :  { %v864_v60 = vpop.f32.mrf.mxu3 }
  0xbd   :  { %v825_v58 = vpop.f32.mrf.mxu0 }
  0xbe   :  { %v826_v59 = vadd.f32 %v825_v58, %v235_v56  ;;  %v838_v61 = vpop.f32.mrf.mxu1 }
  0xbf   :  { %v851_v63 = vpop.f32.mrf.mxu2 }
  0xc0   :  { %v839_v0 = vadd.f32 %v838_v61, %v826_v59 }
  0xc2   :  { %v852_v1 = vadd.f32 %v851_v63, %v839_v0 }
  0xc3   :  { %v866_v8 = vpop.f32.mrf.mxu3 }
  0xc4   :  { %v865_v4 = vadd.f32 %v864_v60, %v852_v1 }
  0xc5   :  { %v827_v6 = vpop.f32.mrf.mxu0 }
  0xc6   :  { %v1024_v7 = vmax.f32 %v865_v4, 0.0  ;;  %v840_v9 = vpop.f32.mrf.mxu1 }
  0xc7   :  { %v853_v11 = vpop.f32.mrf.mxu2  ;;  %v2211_v9 = vld [vmem:[#allocation10 + $0x38] sm:$0xff] }
  0xc8   :  { %v1028_v12 = vpack.c.bf16 %v1024_v7, %v1024_v7  ;;  %1414 = vmatpush.bf16.msra.mxu0 %v2211_v9  ;;  %v2209_v11 = vld [vmem:[#allocation10 + $0x28] sm:$0xff] }
  0xca   :  { %1300 = vmatmul.bf16.vlgmr.msrb.gmra.mxu0 %v1028_v12  ;;  %v2208_v12 = vld [vmem:[#allocation10 + $0x20] sm:$0xff] }
  0xcc   :  { %1415 = vmatpush.bf16.msra.mxu0 %v2210_v54 }
  0xcf   :  { %v916_v17 = vpop.f32.mrf.mxu2 }
  0xd0   :  { %1416 = vmatpush.bf16.msra.mxu0 %v2209_v11 }
  0xd1   :  { %v877_v15 = vpop.f32.mrf.mxu3 }
  0xd2   :  { %v878_v16 = vadd.f32 %v877_v15, %v236_v13  ;;  %v2207_v13 = vld [vmem:[#allocation10 + $0x18] sm:$0xff]  ;;  %v2205_v15 = vld [vmem:[#allocation10 + $0x8] sm:$0xff] }
  0xd4   :  { %1417 = vmatpush.bf16.msra.mxu0 %v2208_v12 }
  0xd7   :  { %v890_v19 = vpop.f32.mrf.mxu0  ;;  %v918_v30 = vpop.f32.mrf.mxu2 }
  0xd8   :  { %v891_v20 = vadd.f32 %v890_v19, %v878_v16  ;;  %1418 = vmatpush.bf16.msra.mxu0 %v2207_v13  ;;  %v2204_v16 = vld [vmem:[#allocation10] sm:$0xff] }
  0xd9   :  { %v879_v25 = vpop.f32.mrf.mxu3  ;;  %v2222_v19 = vld [vmem:[%s2492_s4] ss:$0 sm:$0xff]  ;;  %s1436_s4 = sshll.u32 %s2495_s7, 4  ;;  %s1437_s4 = int_to_ptr.hbm [resolvable:$true] %s1436_s4 }
  0xda   :  { %v903_v21 = vpop.f32.mrf.mxu1  ;;  %v2223_v30 = vld [vmem:[%s2494_s6] ss:$0 sm:$0xff] }
  0xdb   :  { %v904_v24 = vadd.f32 %v903_v21, %v891_v20 }
  0xdc   :  { %1419 = vmatpush.bf16.msra.mxu0 %v2206_v14 }
  0xdd   :  { %v917_v27 = vadd.f32 %v916_v17, %v904_v24 }
  0xdf   :  { %v1025_v31 = vmax.f32 %v917_v27, 0.0  ;;  %v892_v32 = vpop.f32.mrf.mxu0 }
  0xe0   :  { %1420 = vmatpush.bf16.msra.mxu0 %v2205_v15 }
  0xe1   :  { %v1029_v33 = vpack.c.bf16 %v1025_v31, %v1025_v31 }
  0xe2   :  { %v905_v34 = vpop.f32.mrf.mxu1 }
  0xe3   :  { %1313 = vmatmul.bf16.vlgmr.msrb.gmra.mxu1 %v1029_v33 }
  0xe4   :  { %1421 = vmatpush.bf16.msra.mxu0 %v2204_v16 }
  0xea   :  { %v968_v37 = vpop.f32.mrf.mxu1 }
  0xef   :  { %v929_v40 = vpop.f32.mrf.mxu2 }
  0xf0   :  { %v930_v43 = vadd.f32 %v929_v40, %v237_v39 }
  0xf1   :  { %v942_v42 = vpop.f32.mrf.mxu3 }
  0xf2   :  { %v970_v44 = vpop.f32.mrf.mxu1  ;;  %v943_v46 = vadd.f32 %v942_v42, %v930_v43 }
  0xf7   :  { %v931_v47 = vpop.f32.mrf.mxu2  ;;  %v955_v48 = vpop.f32.mrf.mxu0 }
  0xf8   :  { %v956_v29 = vadd.f32 %v955_v48, %v943_v46 }
  0xf9   :  { %v944_v49 = vpop.f32.mrf.mxu3 }
  0xfa   :  { %v969_v5 = vadd.f32 %v968_v37, %v956_v29 }
  0xfc   :  { %v1026_v50 = vmax.f32 %v969_v5, 0.0 }
  0xfe   :  { %v1030_v51 = vpack.c.bf16 %v1026_v50, %v1026_v50 }
  0xff   :  { %v957_v52 = vpop.f32.mrf.mxu0 }
 0x100   :  { %1326 = vmatmul.bf16.vlgmr.msra.gmra.mxu2 %v1030_v51 }
 0x108   :  { %v981_v53 = vpop.f32.mrf.mxu1 }
 0x109   :  { %v982_v58 = vadd.f32 %v981_v53, %v238_v2 }
 0x10f   :  { %v994_v55 = vpop.f32.mrf.mxu2 }
 0x110   :  { %v983_v57 = vpop.f32.mrf.mxu1  ;;  %v995_v59 = vadd.f32 %v994_v55, %v982_v58 }
 0x111   :  { %v1007_v56 = vpop.f32.mrf.mxu3 }
 0x112   :  { %v1008_v60 = vadd.f32 %v1007_v56, %v995_v59 }
 0x117   :  { %v996_v61 = vpop.f32.mrf.mxu2 }
 0x118   :  { %v1020_v63 = vpop.f32.mrf.mxu1 }
 0x119   :  { %v1009_v62 = vpop.f32.mrf.mxu3  ;;  %v1021_v0 = vadd.f32 %v1020_v63, %v1008_v60 }
 0x11b   :  { %v1027_v1 = vmax.f32 %v1021_v0, 0.0 }
 0x11d   :  { %v1031_v3 = vpack.c.bf16 %v1027_v1, %v1027_v1 }
 0x11f   :  { %1339 = vmatmul.bf16.vlgmr.msra.gmra.mxu3 %v1031_v3 }
 0x120   :  { %v1022_v4 = vpop.f32.mrf.mxu1 }
 0x147   :  { %v1301_v6 = vpop.f32.mrf.mxu0 }
 0x148   :  { %v1302_v20 = vadd.f32 %v2222_v19, %v1301_v6 }
 0x14f   :  { %v1303_v7 = vpop.f32.mrf.mxu0 }
 0x160   :  { %v1314_v8 = vpop.f32.mrf.mxu1 }
 0x161   :  { %v1315_v21 = vadd.f32 %v1314_v8, %v1302_v20 }
 0x168   :  { %v1316_v10 = vpop.f32.mrf.mxu1 }
 0x183   :  { %v1327_v17 = vpop.f32.mrf.mxu2 }
 0x184   :  { %v1328_v22 = vadd.f32 %v1327_v17, %v1315_v21 }
 0x18b   :  { %v1329_v18 = vpop.f32.mrf.mxu2 }
 0x1a2   :  { %v1340_v23 = vpop.f32.mrf.mxu3 }
 0x1a3   :  { %v1341_v24 = vadd.f32 %v1340_v23, %v1328_v22 }
 0x1a5   :  { %v1344_v25 = vmax.f32 %v1341_v24, 0.0 }
 0x1a7   :  { %v1345_v27 = vpack.c.bf16 %v1344_v25, %v1344_v25 }
 0x1a9   :  { %1422 = vmatmul.bf16.vlgmr.msra.gmra.mxu0 %v1345_v27 }
 0x1aa   :  { %v1342_v28 = vpop.f32.mrf.mxu3 }
 0x226   :  { %v1423_v31 = vpop.f32.mrf.mxu0 }
 0x227   :  { %v1424_v32 = vadd.f32 %v2223_v30, %v1423_v31 }
 0x229   :  { %v1427_v33 = vpack.c.bf16 %v1424_v32, %v1424_v32 }
 0x22b   :  { %1428 = vst [vmem:[#allocation11] sm:$0x3] %v1427_v33 }
 0x22c   :  { %1439 = dma.vmem_to_hbm [thread:$0]  %s1435_s30, 32, %s1437_s4, [#allocation4]  }
 0x22e   :  { %v1425_v34 = vpop.f32.mrf.mxu0 }
 0x22f   :  { %2374 = dma.done.wait [#allocation4], 32  }
 0x230   :  { %2375 = vsyncadd [#allocation4], 4294967264 }
 0x231   :  { %1444 = vsyncpa [#allocation3], 1 }
 0x232   :  { %1445 = vsyncpa [#allocation6], 1 }
 0x233   :  { %1446 = vsyncpa [#allocation9], 1 }
 0x234   :  { %1447 = vsyncpa [#allocation4], 1 }

</bundles_post_ra>
